<compile_context>
chip_gen: v7x
topology: tpu7x:2x2x1
jax: 0.10.0
libtpu: 0.0.40
codegen_flags: <defaults>
</compile_context>

<pallas_src>
import functools

import jax
import jax.numpy as jnp
import numpy as np
from jax import lax
from jax.experimental import pallas as pl
from jax.experimental.pallas import tpu as pltpu


# ----------------------------------------------------------------------------
# Fused Pallas kernel: Bb batch elements per grid step.
# ----------------------------------------------------------------------------
def _fused_attention_kernel(x_ref, wq_ref, wk_ref, wv_ref, wo_ref, bout_ref,
                            o_ref, *, heads):
    """Refs:
        x_ref    : (Bb, N, C)        batch block for this grid step
        wq_ref   : (heads, C, D)     per-head q weight, pre-scaled by dim**-0.5
        wk_ref   : (heads, C, D)     per-head k weight
        wv_ref   : (heads, C, D)     per-head v weight
        wo_ref   : (heads, D, C)     per-head output-projection weight
        bout_ref : (1, C)            output-projection bias
        o_ref    : (Bb, N, C)        output block
    """
    Bb, N, C = x_ref.shape
    D = wq_ref.shape[2]
    M = Bb * N

    # Flatten the batch block to one (Bb*N, C) operand: taller MXU M, single
    # projection matmul per head.  Leading-dim merge only (N == 8 == sublane
    # tile), so no relayout.
    xf = x_ref[...].reshape(M, C)

    # Accumulator seeded with the broadcast f32 bias (saves a final add).
    acc = jnp.broadcast_to(bout_ref[...].astype(jnp.float32), (M, C))

    # Static loop over heads (heads is tiny).  Per-head weights are indexed on
    # a *leading* axis of the resident weight refs -> no sub-128-lane slicing.
    # TODO(synk): if heads/N grow, switch to lax.fori_loop(unroll=True) or a
    #             VMEM scratch accumulator to bound vreg live ranges.
    for h in range(heads):
        q = jnp.dot(xf, wq_ref[h], preferred_element_type=jnp.float32)   # (M, D), scale pre-folded
        k = jnp.dot(xf, wk_ref[h], preferred_element_type=jnp.float32)   # (M, D)
        v = jnp.dot(xf, wv_ref[h], preferred_element_type=jnp.float32)   # (M, D)

        q3 = q.reshape(Bb, N, D)
        k3 = k.reshape(Bb, N, D)
        v3 = v.reshape(Bb, N, D)

        # q @ k^T per batch element -- contract D on both, batch over Bb
        # (no explicit transpose).
        dots = lax.dot_general(q3, k3, (((2,), (2,)), ((0,), (0,))),
                               preferred_element_type=jnp.float32)        # (Bb, N, N)

        # Numerically-stable softmax over the last axis.
        m = jnp.max(dots, axis=-1, keepdims=True)
        p = jnp.exp(dots - m)
        denom = jnp.sum(p, axis=-1, keepdims=True)
        # EUP approximate reciprocal + one Newton step: the EUP slot is idle
        # after exp, and the refinement keeps ~full f32 accuracy.
        r = pl.reciprocal(denom, approx=True)
        r = r * (2.0 - denom * r)
        attn = p * r

        out_h = lax.dot_general(attn, v3, (((2,), (1,)), ((0,), (0,))),
                                preferred_element_type=jnp.float32)       # (Bb, N, D)

        # Fold the output projection into the head loop:
        #   concat_h(out_h) @ W_out == sum_h out_h @ W_out[h]
        acc = acc + jnp.dot(out_h.reshape(M, D), wo_ref[h],
                            preferred_element_type=jnp.float32)

    o_ref[...] = acc.reshape(Bb, N, C).astype(o_ref.dtype)


# ----------------------------------------------------------------------------
# Module forward: single pallas_call, grid over batch blocks ("parallel" ->
# shards across TensorCores on v7x; trivially cheap on v5e/v6e).
# ----------------------------------------------------------------------------
def attention_forward(x, w_qkv, w_out, b_out, *, heads):
    """Equivalent to Attention.forward(x, mask=None).

    x      : (B, N, C)
    w_qkv  : (C, 3*inner)   stored as (in, out) for y = x @ W   (no bias)
    w_out  : (inner, C)
    b_out  : (1, C)
    """
    B, N, C = x.shape
    inner = w_qkv.shape[1] // 3
    dim_head = inner // heads
    # Faithful to the reference module: scale = dim**-0.5 (model dim C), NOT
    # dim_head**-0.5.  Do not "fix".
    scale = float(C) ** (-0.5)

    # ---- one-time parameter prep (host/XLA side; constant-folds under jit) --
    # Split the fused qkv weight into per-head (C, D) blocks so the kernel
    # indexes heads on a leading axis, and fold the softmax scale into W_q.
    w_q, w_k, w_v = jnp.split(w_qkv, 3, axis=1)                 # each (C, inner)

    def per_head(w):                                            # (C, inner) -> (H, C, D)
        return w.reshape(C, heads, dim_head).transpose(1, 0, 2)

    w_qh = per_head(w_q) * scale
    w_kh = per_head(w_k)
    w_vh = per_head(w_v)
    w_oh = w_out.reshape(heads, dim_head, C)                    # (H, D, C)

    # ---- grid selection: batch several elements per step; keep 2 steps when
    # possible so v7x's two TensorCores both get work via the parallel axis.
    num_blocks = 2 if (B % 2 == 0 and B >= 2) else 1
    Bb = B // num_blocks

    kern = functools.partial(_fused_attention_kernel, heads=heads)

    return pl.pallas_call(
        kern,
        out_shape=jax.ShapeDtypeStruct((B, N, C), x.dtype),
        grid=(num_blocks,),
        in_specs=[
            pl.BlockSpec((Bb, N, C), lambda b: (b, 0, 0)),            # x batch block
            pl.BlockSpec((heads, C, dim_head), lambda b: (0, 0, 0)),  # W_q (scaled), resident
            pl.BlockSpec((heads, C, dim_head), lambda b: (0, 0, 0)),  # W_k, resident
            pl.BlockSpec((heads, C, dim_head), lambda b: (0, 0, 0)),  # W_v, resident
            pl.BlockSpec((heads, dim_head, C), lambda b: (0, 0, 0)),  # W_out per head, resident
            pl.BlockSpec((1, C), lambda b: (0, 0)),                   # b_out, resident
        ],
        out_specs=pl.BlockSpec((Bb, N, C), lambda b: (b, 0, 0)),
        compiler_params=pltpu.CompilerParams(
            dimension_semantics=("parallel",),
        ),
    )(x, w_qh, w_kh, w_vh, w_oh, b_out)


# ----------------------------------------------------------------------------
# Reference (pure jnp) for a correctness sanity check
# ----------------------------------------------------------------------------
def attention_reference(x, w_qkv, w_out, b_out, *, heads):
    B, N, C = x.shape
    inner = w_qkv.shape[1] // 3
    d = inner // heads
    scale = float(C) ** (-0.5)
    qkv = x @ w_qkv
    q, k, v = jnp.split(qkv, 3, axis=-1)

    def to_bhnd(t):
        return t.reshape(B, N, heads, d).transpose(0, 2, 1, 3)

    q, k, v = to_bhnd(q), to_bhnd(k), to_bhnd(v)
    dots = jnp.einsum("bhid,bhjd->bhij", q, k) * scale
    attn = jax.nn.softmax(dots, axis=-1)
    out = jnp.einsum("bhij,bhjd->bhid", attn, v)
    out = out.transpose(0, 2, 1, 3).reshape(B, N, inner)
    return out @ w_out + b_out[0]


# ----------------------------------------------------------------------------
if __name__ == "__main__":
    # Small shapes consistent with the module: dim=32, heads=2, dim_head=16.
    # B=4 exercises Bb=2 batch elements per grid step (grid=(2,)).
    B, N, dim = 4, 8, 32
    heads, dim_head = 2, 16
    inner_dim = heads * dim_head  # 32

    key = jax.random.PRNGKey(0)
    kx, kqkv, kout, kbias = jax.random.split(key, 4)

    x = jax.random.normal(kx, (B, N, dim), dtype=jnp.float32)
    # Deterministic synthetic parameters (stored as (in, out) for y = x @ W).
    w_qkv = jax.random.normal(kqkv, (dim, inner_dim * 3), dtype=jnp.float32) * 0.05
    w_out = jax.random.normal(kout, (inner_dim, dim), dtype=jnp.float32) * 0.05
    b_out = jax.random.normal(kbias, (1, dim), dtype=jnp.float32) * 0.05

    y = attention_forward(x, w_qkv, w_out, b_out, heads=heads)
    y = jax.block_until_ready(y)

    y_ref = attention_reference(x, w_qkv, w_out, b_out, heads=heads)
    np.testing.assert_allclose(np.asarray(y), np.asarray(y_ref), rtol=1e-4, atol=1e-4)

    print("KERNEL_OK")
</pallas_src>

<mosaic_0001>
module attributes {stable_mosaic.version = 11 : i64} {
  func.func @_fused_attention_kernel(%arg0: i32, %arg1: memref<2x8x32xf32, #tpu.memory_space<vmem>>, %arg2: memref<2x32x16xf32, #tpu.memory_space<vmem>>, %arg3: memref<2x32x16xf32, #tpu.memory_space<vmem>>, %arg4: memref<2x32x16xf32, #tpu.memory_space<vmem>>, %arg5: memref<2x16x32xf32, #tpu.memory_space<vmem>>, %arg6: memref<1x32xf32, #tpu.memory_space<vmem>>, %arg7: memref<2x8x32xf32, #tpu.memory_space<vmem>>) attributes {dimension_semantics = [#tpu.dimension_semantics<parallel>], iteration_bounds = array<i64: 2>, scalar_prefetch = 0 : i64, scratch_operands = 0 : i64, tpu.core_type = #tpu.core_type<tc>, window_params = [{transform_indices = @transform_0, window_bounds = array<i64: 2, 8, 32>}, {pipeline_mode = #tpu.pipeline_mode<synchronous>, transform_indices = @transform_1, window_bounds = array<i64: 2, 32, 16>}, {pipeline_mode = #tpu.pipeline_mode<synchronous>, transform_indices = @transform_2, window_bounds = array<i64: 2, 32, 16>}, {pipeline_mode = #tpu.pipeline_mode<synchronous>, transform_indices = @transform_3, window_bounds = array<i64: 2, 32, 16>}, {pipeline_mode = #tpu.pipeline_mode<synchronous>, transform_indices = @transform_4, window_bounds = array<i64: 2, 16, 32>}, {pipeline_mode = #tpu.pipeline_mode<synchronous>, transform_indices = @transform_5, window_bounds = array<i64: 1, 32>}, {transform_indices = @transform_6, window_bounds = array<i64: 2, 8, 32>}]} {
    %c0 = arith.constant 0 : index
    %c0_0 = arith.constant 0 : index
    %c0_1 = arith.constant 0 : index
    %0 = vector.load %arg1[%c0, %c0_0, %c0_1] : memref<2x8x32xf32, #tpu.memory_space<vmem>>, vector<2x8x32xf32>
    %1 = vector.shape_cast %0 : vector<2x8x32xf32> to vector<16x32xf32>
    %c0_2 = arith.constant 0 : index
    %c0_3 = arith.constant 0 : index
    %2 = vector.load %arg6[%c0_2, %c0_3] : memref<1x32xf32, #tpu.memory_space<vmem>>, vector<1x32xf32>
    %3 = vector.shape_cast %2 : vector<1x32xf32> to vector<1x32xf32>
    %4 = vector.broadcast %3 : vector<1x32xf32> to vector<16x32xf32>
    %c0_4 = arith.constant 0 : index
    %c0_5 = arith.constant 0 : index
    %c0_6 = arith.constant 0 : index
    %5 = vector.load %arg2[%c0_4, %c0_5, %c0_6] : memref<2x32x16xf32, #tpu.memory_space<vmem>>, vector<1x32x16xf32>
    %6 = vector.shape_cast %5 : vector<1x32x16xf32> to vector<32x16xf32>
    %cst = arith.constant dense<0.000000e+00> : vector<16x16xf32>
    %7 = tpu.matmul %1, %6, %cst {dimension_numbers = #tpu.dot_dimension_numbers<[1], [0], [0], [1], [0, 0, 1, 1], [], []>} : vector<16x32xf32>, vector<32x16xf32>, vector<16x16xf32> -> vector<16x16xf32>
    %c0_7 = arith.constant 0 : index
    %c0_8 = arith.constant 0 : index
    %c0_9 = arith.constant 0 : index
    %8 = vector.load %arg3[%c0_7, %c0_8, %c0_9] : memref<2x32x16xf32, #tpu.memory_space<vmem>>, vector<1x32x16xf32>
    %9 = vector.shape_cast %8 : vector<1x32x16xf32> to vector<32x16xf32>
    %cst_10 = arith.constant dense<0.000000e+00> : vector<16x16xf32>
    %10 = tpu.matmul %1, %9, %cst_10 {dimension_numbers = #tpu.dot_dimension_numbers<[1], [0], [0], [1], [0, 0, 1, 1], [], []>} : vector<16x32xf32>, vector<32x16xf32>, vector<16x16xf32> -> vector<16x16xf32>
    %c0_11 = arith.constant 0 : index
    %c0_12 = arith.constant 0 : index
    %c0_13 = arith.constant 0 : index
    %11 = vector.load %arg4[%c0_11, %c0_12, %c0_13] : memref<2x32x16xf32, #tpu.memory_space<vmem>>, vector<1x32x16xf32>
    %12 = vector.shape_cast %11 : vector<1x32x16xf32> to vector<32x16xf32>
    %cst_14 = arith.constant dense<0.000000e+00> : vector<16x16xf32>
    %13 = tpu.matmul %1, %12, %cst_14 {dimension_numbers = #tpu.dot_dimension_numbers<[1], [0], [0], [1], [0, 0, 1, 1], [], []>} : vector<16x32xf32>, vector<32x16xf32>, vector<16x16xf32> -> vector<16x16xf32>
    %14 = vector.shape_cast %7 : vector<16x16xf32> to vector<2x8x16xf32>
    %15 = vector.shape_cast %10 : vector<16x16xf32> to vector<2x8x16xf32>
    %16 = vector.shape_cast %13 : vector<16x16xf32> to vector<2x8x16xf32>
    %cst_15 = arith.constant dense<0.000000e+00> : vector<2x8x8xf32>
    %17 = tpu.matmul %14, %15, %cst_15 {dimension_numbers = #tpu.dot_dimension_numbers<[2], [2], [1], [1], [0, 0, 0, 1, 1, 1], [0], [0]>} : vector<2x8x16xf32>, vector<2x8x16xf32>, vector<2x8x8xf32> -> vector<2x8x8xf32>
    %cst_16 = arith.constant dense<0xFF800000> : vector<2x8xf32>
    %18 = vector.multi_reduction <maximumf>, %17, %cst_16 [2] : vector<2x8x8xf32> to vector<2x8xf32>
    %19 = vector.shape_cast %18 : vector<2x8xf32> to vector<2x8x1xf32>
    %20 = vector.broadcast %19 : vector<2x8x1xf32> to vector<2x8x8xf32>
    %21 = arith.subf %17, %20 : vector<2x8x8xf32>
    %22 = math.exp %21 : vector<2x8x8xf32>
    %cst_17 = arith.constant dense<0.000000e+00> : vector<2x8xf32>
    %23 = vector.multi_reduction <add>, %22, %cst_17 [2] : vector<2x8x8xf32> to vector<2x8xf32>
    %24 = vector.shape_cast %23 : vector<2x8xf32> to vector<2x8x1xf32>
    %25 = tpu.reciprocal %24 {approx = true} : vector<2x8x1xf32> -> vector<2x8x1xf32>
    %26 = arith.mulf %24, %25 : vector<2x8x1xf32>
    %cst_18 = arith.constant 2.000000e+00 : f32
    %27 = vector.broadcast %cst_18 : f32 to vector<2x8x1xf32>
    %28 = arith.subf %27, %26 : vector<2x8x1xf32>
    %29 = arith.mulf %25, %28 : vector<2x8x1xf32>
    %30 = vector.broadcast %29 : vector<2x8x1xf32> to vector<2x8x8xf32>
    %31 = arith.mulf %22, %30 : vector<2x8x8xf32>
    %cst_19 = arith.constant dense<0.000000e+00> : vector<2x8x16xf32>
    %32 = tpu.matmul %31, %16, %cst_19 {dimension_numbers = #tpu.dot_dimension_numbers<[2], [1], [1], [2], [0, 0, 0, 1, 1, 2], [0], [0]>} : vector<2x8x8xf32>, vector<2x8x16xf32>, vector<2x8x16xf32> -> vector<2x8x16xf32>
    %33 = vector.shape_cast %32 : vector<2x8x16xf32> to vector<16x16xf32>
    %c0_20 = arith.constant 0 : index
    %c0_21 = arith.constant 0 : index
    %c0_22 = arith.constant 0 : index
    %34 = vector.load %arg5[%c0_20, %c0_21, %c0_22] : memref<2x16x32xf32, #tpu.memory_space<vmem>>, vector<1x16x32xf32>
    %35 = vector.shape_cast %34 : vector<1x16x32xf32> to vector<16x32xf32>
    %cst_23 = arith.constant dense<0.000000e+00> : vector<16x32xf32>
    %36 = tpu.matmul %33, %35, %cst_23 {dimension_numbers = #tpu.dot_dimension_numbers<[1], [0], [0], [1], [0, 0, 1, 1], [], []>} : vector<16x16xf32>, vector<16x32xf32>, vector<16x32xf32> -> vector<16x32xf32>
    %37 = arith.addf %4, %36 : vector<16x32xf32>
    %c1 = arith.constant 1 : index
    %c0_24 = arith.constant 0 : index
    %c0_25 = arith.constant 0 : index
    %38 = vector.load %arg2[%c1, %c0_24, %c0_25] : memref<2x32x16xf32, #tpu.memory_space<vmem>>, vector<1x32x16xf32>
    %39 = vector.shape_cast %38 : vector<1x32x16xf32> to vector<32x16xf32>
    %cst_26 = arith.constant dense<0.000000e+00> : vector<16x16xf32>
    %40 = tpu.matmul %1, %39, %cst_26 {dimension_numbers = #tpu.dot_dimension_numbers<[1], [0], [0], [1], [0, 0, 1, 1], [], []>} : vector<16x32xf32>, vector<32x16xf32>, vector<16x16xf32> -> vector<16x16xf32>
    %c1_27 = arith.constant 1 : index
    %c0_28 = arith.constant 0 : index
    %c0_29 = arith.constant 0 : index
    %41 = vector.load %arg3[%c1_27, %c0_28, %c0_29] : memref<2x32x16xf32, #tpu.memory_space<vmem>>, vector<1x32x16xf32>
    %42 = vector.shape_cast %41 : vector<1x32x16xf32> to vector<32x16xf32>
    %cst_30 = arith.constant dense<0.000000e+00> : vector<16x16xf32>
    %43 = tpu.matmul %1, %42, %cst_30 {dimension_numbers = #tpu.dot_dimension_numbers<[1], [0], [0], [1], [0, 0, 1, 1], [], []>} : vector<16x32xf32>, vector<32x16xf32>, vector<16x16xf32> -> vector<16x16xf32>
    %c1_31 = arith.constant 1 : index
    %c0_32 = arith.constant 0 : index
    %c0_33 = arith.constant 0 : index
    %44 = vector.load %arg4[%c1_31, %c0_32, %c0_33] : memref<2x32x16xf32, #tpu.memory_space<vmem>>, vector<1x32x16xf32>
    %45 = vector.shape_cast %44 : vector<1x32x16xf32> to vector<32x16xf32>
    %cst_34 = arith.constant dense<0.000000e+00> : vector<16x16xf32>
    %46 = tpu.matmul %1, %45, %cst_34 {dimension_numbers = #tpu.dot_dimension_numbers<[1], [0], [0], [1], [0, 0, 1, 1], [], []>} : vector<16x32xf32>, vector<32x16xf32>, vector<16x16xf32> -> vector<16x16xf32>
    %47 = vector.shape_cast %40 : vector<16x16xf32> to vector<2x8x16xf32>
    %48 = vector.shape_cast %43 : vector<16x16xf32> to vector<2x8x16xf32>
    %49 = vector.shape_cast %46 : vector<16x16xf32> to vector<2x8x16xf32>
    %cst_35 = arith.constant dense<0.000000e+00> : vector<2x8x8xf32>
    %50 = tpu.matmul %47, %48, %cst_35 {dimension_numbers = #tpu.dot_dimension_numbers<[2], [2], [1], [1], [0, 0, 0, 1, 1, 1], [0], [0]>} : vector<2x8x16xf32>, vector<2x8x16xf32>, vector<2x8x8xf32> -> vector<2x8x8xf32>
    %cst_36 = arith.constant dense<0xFF800000> : vector<2x8xf32>
    %51 = vector.multi_reduction <maximumf>, %50, %cst_36 [2] : vector<2x8x8xf32> to vector<2x8xf32>
    %52 = vector.shape_cast %51 : vector<2x8xf32> to vector<2x8x1xf32>
    %53 = vector.broadcast %52 : vector<2x8x1xf32> to vector<2x8x8xf32>
    %54 = arith.subf %50, %53 : vector<2x8x8xf32>
    %55 = math.exp %54 : vector<2x8x8xf32>
    %cst_37 = arith.constant dense<0.000000e+00> : vector<2x8xf32>
    %56 = vector.multi_reduction <add>, %55, %cst_37 [2] : vector<2x8x8xf32> to vector<2x8xf32>
    %57 = vector.shape_cast %56 : vector<2x8xf32> to vector<2x8x1xf32>
    %58 = tpu.reciprocal %57 {approx = true} : vector<2x8x1xf32> -> vector<2x8x1xf32>
    %59 = arith.mulf %57, %58 : vector<2x8x1xf32>
    %cst_38 = arith.constant 2.000000e+00 : f32
    %60 = vector.broadcast %cst_38 : f32 to vector<2x8x1xf32>
    %61 = arith.subf %60, %59 : vector<2x8x1xf32>
    %62 = arith.mulf %58, %61 : vector<2x8x1xf32>
    %63 = vector.broadcast %62 : vector<2x8x1xf32> to vector<2x8x8xf32>
    %64 = arith.mulf %55, %63 : vector<2x8x8xf32>
    %cst_39 = arith.constant dense<0.000000e+00> : vector<2x8x16xf32>
    %65 = tpu.matmul %64, %49, %cst_39 {dimension_numbers = #tpu.dot_dimension_numbers<[2], [1], [1], [2], [0, 0, 0, 1, 1, 2], [0], [0]>} : vector<2x8x8xf32>, vector<2x8x16xf32>, vector<2x8x16xf32> -> vector<2x8x16xf32>
    %66 = vector.shape_cast %65 : vector<2x8x16xf32> to vector<16x16xf32>
    %c1_40 = arith.constant 1 : index
    %c0_41 = arith.constant 0 : index
    %c0_42 = arith.constant 0 : index
    %67 = vector.load %arg5[%c1_40, %c0_41, %c0_42] : memref<2x16x32xf32, #tpu.memory_space<vmem>>, vector<1x16x32xf32>
    %68 = vector.shape_cast %67 : vector<1x16x32xf32> to vector<16x32xf32>
    %cst_43 = arith.constant dense<0.000000e+00> : vector<16x32xf32>
    %69 = tpu.matmul %66, %68, %cst_43 {dimension_numbers = #tpu.dot_dimension_numbers<[1], [0], [0], [1], [0, 0, 1, 1], [], []>} : vector<16x16xf32>, vector<16x32xf32>, vector<16x32xf32> -> vector<16x32xf32>
    %70 = arith.addf %37, %69 : vector<16x32xf32>
    %71 = vector.shape_cast %70 : vector<16x32xf32> to vector<2x8x32xf32>
    %c0_44 = arith.constant 0 : index
    %c0_45 = arith.constant 0 : index
    %c0_46 = arith.constant 0 : index
    %72 = vector.load %arg7[%c0_44, %c0_45, %c0_46] : memref<2x8x32xf32, #tpu.memory_space<vmem>>, vector<2x8x32xf32>
    tpu.vector_store %arg7[%c0_44, %c0_45, %c0_46], %71 {strides = array<i32>} : memref<2x8x32xf32, #tpu.memory_space<vmem>>, vector<2x8x32xf32>,
    return
  }
  func.func @transform_0(%arg0: i32) -> (i32, i32, i32) {
    %c0_i32 = arith.constant 0 : i32
    %c0_i32_0 = arith.constant 0 : i32
    %c0_i32_1 = arith.constant 0 : i32
    return %arg0, %c0_i32, %c0_i32_0 : i32, i32, i32
  }
  func.func @transform_1(%arg0: i32) -> (i32, i32, i32) {
    %c0_i32 = arith.constant 0 : i32
    %c0_i32_0 = arith.constant 0 : i32
    %c0_i32_1 = arith.constant 0 : i32
    %c0_i32_2 = arith.constant 0 : i32
    return %c0_i32, %c0_i32_0, %c0_i32_1 : i32, i32, i32
  }
  func.func @transform_2(%arg0: i32) -> (i32, i32, i32) {
    %c0_i32 = arith.constant 0 : i32
    %c0_i32_0 = arith.constant 0 : i32
    %c0_i32_1 = arith.constant 0 : i32
    %c0_i32_2 = arith.constant 0 : i32
    return %c0_i32, %c0_i32_0, %c0_i32_1 : i32, i32, i32
  }
  func.func @transform_3(%arg0: i32) -> (i32, i32, i32) {
    %c0_i32 = arith.constant 0 : i32
    %c0_i32_0 = arith.constant 0 : i32
    %c0_i32_1 = arith.constant 0 : i32
    %c0_i32_2 = arith.constant 0 : i32
    return %c0_i32, %c0_i32_0, %c0_i32_1 : i32, i32, i32
  }
  func.func @transform_4(%arg0: i32) -> (i32, i32, i32) {
    %c0_i32 = arith.constant 0 : i32
    %c0_i32_0 = arith.constant 0 : i32
    %c0_i32_1 = arith.constant 0 : i32
    %c0_i32_2 = arith.constant 0 : i32
    return %c0_i32, %c0_i32_0, %c0_i32_1 : i32, i32, i32
  }
  func.func @transform_5(%arg0: i32) -> (i32, i32) {
    %c0_i32 = arith.constant 0 : i32
    %c0_i32_0 = arith.constant 0 : i32
    %c0_i32_1 = arith.constant 0 : i32
    return %c0_i32, %c0_i32_0 : i32, i32
  }
  func.func @transform_6(%arg0: i32) -> (i32, i32, i32) {
    %c0_i32 = arith.constant 0 : i32
    %c0_i32_0 = arith.constant 0 : i32
    %c0_i32_1 = arith.constant 0 : i32
    return %arg0, %c0_i32, %c0_i32_0 : i32, i32, i32
  }
}

</mosaic_0001>

<bundles_post_ra>
// kernel: tpu_custom_call.1
= control target key start
LH: loop header
LB: loop body
LE: loop exit
PB: predicated region body
PF: predicated region fallthrough
CT: control target
= control target key end

     0   :  { %11 = vsyncpa [#allocation3], 0  ;;  %s2375_s0 = inlined_call_operand.vmem [shape: f32[4,8,32], index: 0, kind: input, shape index: {}]   ;;  %s2376_s1 = inlined_call_operand.vmem [shape: f32[2,32,16], index: 1, kind: input, shape index: {}]   ;;  %s2377_s2 = inlined_call_operand.vmem [shape: f32[2,32,16], index: 2, kind: input, shape index: {}]   ;;  %s2378_s3 = inlined_call_operand.vmem [shape: f32[2,32,16], index: 3, kind: input, shape index: {}]   ;;  %s2379_s4 = inlined_call_operand.vmem [shape: f32[2,16,32], index: 4, kind: input, shape index: {}]   ;;  %s2380_s5 = inlined_call_operand.vmem [shape: f32[1,32], index: 5, kind: input, shape index: {}]   ;;  %s2381_s6 = inlined_call_operand.hbm [shape: f32[4,8,32], index: 6, kind: output, shape index: {}]  }
   0x1   :  { %13 = vsyncpa [#allocation3 + $0x1], 0  ;;  %s2108_s21 = smov 0   ;;  %s2110_s22 = smov 0  }
   0x2   :  { %s2112_s23 = smov 0   ;;  %s2114_s24 = smov 0  }
   0x3 LB: > { %s2129_s25 = sadd.s32 4294967295, %s2066_s24   ;;  %s1649_s26 = sadd.s32 4294967294, %s2066_s24   ;;  %s2066_s24 = sphi %s2114_s24, %s2387_s24   ;;  %s2062_s23 = sphi %s2112_s23, %s2386_s23   ;;  %s2058_s22 = sphi %s2110_s22, %s2385_s22   ;;  %s2054_s21 = sphi %s2108_s21, %s2384_s21  }
   0x4   : > { %s2133_s27 = sadd.s32 1, %s2066_s24   ;;  %s157_s28 = sadd.s32 1, %s2062_s23 }
   0x5   : > { %s154_s29 = ssub.s32 %s2066_s24, %s2133_s27  ;;  %p167_p0 = scmp.ne.s32.totalorder %s2062_s23, %s2058_s22 }
   0x6   : > { %p155_p1 = scmp.eq.s32.totalorder %s154_s29, 0  ;;  %p168_p2 = scmp.eq.s32.totalorder %s2129_s25, 1 }
   0x7   : > { %p173_p3 = scmp.ne.s32.totalorder %s2058_s22, %s2054_s21  ;;  %p174_p4 = scmp.eq.s32.totalorder %s1649_s26, 1 }
   0x8   : > { %s2144_s30 = scalar_select %p155_p1, %s2062_s23, %s157_s28  }
   0x9   : > { %p2146_p5 = por %p168_p2, %p167_p0  ;;  %p2150_p6 = por %p174_p4, %p173_p3 }
   0xa   : > { %p1652_p7 = scmp.ge.s32.totalorder %s2066_s24, 1  ;;  %p216_p8 = scmp.lt.s32.totalorder %s2066_s24, 3 }
   0xc   : > { %p217_p9 = pnand %p1652_p7, %p216_p8 }
   0xd   : > { %v348_v0 = vld [vmem:[%s2377_s2] sm:$0xff] (!%p217_p9)  ;;  %v349_v1 = vld [vmem:[%s2377_s2 + $0x8] sm:$0xff] (!%p217_p9)  ;;  %s1654_s15 = sshll.u32 (!%p217_p9), %s2129_s25, 1  ;;  %v350_v5 = vld [vmem:[%s2377_s2 + $0x10] sm:$0xff] (!%p217_p9)  ;;  %vm266_vm0 = vcmask (!%p217_p9), 261120   ;;  %v2068_v14 = vmov (!%p217_p9), 0.0  }
   0xe   : > { %220 = sbr.rel (%p217_p9) target bundleno = 2192 (0x890), region = 44  ;;  %v262_v2 = vld [vmem:[%s2376_s1] sm:$0xff] (!%p217_p9)  ;;  %v1893_v3 = vpack.c.bf16 (!%p217_p9), %v349_v1, %v348_v0  ;;  %v263_v4 = vld [vmem:[%s2376_s1 + $0x8] sm:$0xff] (!%p217_p9)  ;;  %v351_v6 = vld [vmem:[%s2377_s2 + $0x18] sm:$0xff] (!%p217_p9)  ;;  %p247_p10 = scmp.lt.s32.totalorder (!%p217_p9), %s1654_s15, 3  ;;  %vm2069_vm1 = vmmov (!%p217_p9), 0  }
   0xf   : > { %v1885_v7 = vpack.c.bf16 (!%p217_p9), %v263_v4, %v262_v2  ;;  %v1897_v8 = vpack.c.bf16 (!%p217_p9), %v351_v6, %v350_v5  ;;  %v264_v9 = vld [vmem:[%s2376_s1 + $0x10] sm:$0xff] (!%p217_p9)  ;;  %v265_v10 = vld [vmem:[%s2376_s1 + $0x18] sm:$0xff] (!%p217_p9)  ;;  %vm506_vm2 = vcmask (!%p217_p9), 130048   ;;  %v427_v19 = vld [vmem:[%s2378_s3] sm:$0xff] (!%p217_p9)  ;;  %vm659_vm3 = vcmask (!%p217_p9), 64512   ;;  %s243_s10 = sand.u32 (!%p217_p9), 1, %s2058_s22  }
  0x10   : > { %1894 = vmatprep.subr.bf16.mxu1 (!%p217_p9), %v1893_v3  ;;  %v1889_v11 = vpack.c.bf16 (!%p217_p9), %v265_v10, %v264_v9  ;;  %v428_v20 = vld [vmem:[%s2378_s3 + $0x8] sm:$0xff] (!%p217_p9)  ;;  %v429_v21 = vld [vmem:[%s2378_s3 + $0x10] sm:$0xff] (!%p217_p9)  ;;  %v430_v23 = vld [vmem:[%s2378_s3 + $0x18] sm:$0xff] (!%p217_p9)  ;;  %s1704_s16 = sshll.u32 (!%p217_p9), %s2129_s25, 8  ;;  %s2334_s20 = scalar_lea.sflag (!%p217_p9), [#allocation3], %s243_s10 }
  0x11   : > { %1896 = vmatpush3.bf16.msra.mxu1 (!%p217_p9), %v1893_v3  ;;  %1886 = vmatprep.subr.bf16.mxu0 (!%p217_p9), %v1885_v7  ;;  %v1901_v22 = vpack.c.bf16 (!%p217_p9), %v428_v20, %v427_v19  ;;  %v1905_v24 = vpack.c.bf16 (!%p217_p9), %v430_v23, %v429_v21  ;;  %v834_v55 = vld [vmem:[%s2379_s4] sm:$0xff] (!%p217_p9)  ;;  %v835_v56 = vld [vmem:[%s2379_s4 + $0x8] sm:$0xff] (!%p217_p9)  ;;  %v1673_v0 = vld [vmem:[%s2376_s1 + $0x30] sm:$0xff] (!%p217_p9)  ;;  %s2330_s19 = scalar_lea.hbm (!%p217_p9), %s2381_s6, %s1704_s16  ;;  %s2070_s26 = smov (!%p217_p9), [#allocation2]  }
  0x12   : > { %1888 = vmatpush3.bf16.msra.mxu0 (!%p217_p9), %v1885_v7  ;;  %1898 = vmatprep.subr.bf16.mxu1 (!%p217_p9), %v1897_v8  ;;  %v1909_v57 = vpack.c.bf16 (!%p217_p9), %v835_v56, %v834_v55  ;;  %v1677_v58 = vld [vmem:[%s2377_s2 + $0x20] sm:$0xff] (!%p217_p9)  ;;  %v1678_v59 = vld [vmem:[%s2377_s2 + $0x28] sm:$0xff] (!%p217_p9)  ;;  %v1674_v1 = vld [vmem:[%s2376_s1 + $0x38] sm:$0xff] (!%p217_p9)  ;;  %s2008_s28 = sshll.u32 (!%p217_p9), %s2070_s26, 4  ;;  %s2009_s28 = int_to_ptr.vmem [resolvable:$false] %s2008_s28 }
  0x13   : > { %1890 = vmatprep.subr.bf16.mxu0 (!%p217_p9), %v1889_v11  ;;  %v1921_v60 = vpack.c.bf16 (!%p217_p9), %v1678_v59, %v1677_v58  ;;  %v1671_v61 = vld [vmem:[%s2376_s1 + $0x20] sm:$0xff] (!%p217_p9)  ;;  %v1672_v62 = vld [vmem:[%s2376_s1 + $0x28] sm:$0xff] (!%p217_p9)  ;;  %v1917_v2 = vpack.c.bf16 (!%p217_p9), %v1674_v1, %v1673_v0  ;;  %v1679_v4 = vld [vmem:[%s2377_s2 + $0x30] sm:$0xff] (!%p217_p9)  ;;  %s2010_s29 = scalar_lea.vmem (!%p217_p9), %s2009_s28, 512 }
  0x14   : > { %v1913_v63 = vpack.c.bf16 (!%p217_p9), %v1672_v62, %v1671_v61  ;;  %v1680_v5 = vld [vmem:[%s2377_s2 + $0x38] sm:$0xff] (!%p217_p9) }
  0x15   : > { %s2389_s15 = smov (!%p247_p10, %s1654_s15), 3  ;;  %1900 = vmatpush3.bf16.msra.mxu1 %v1897_v8  ;;  %v1925_v7 = vpack.c.bf16 %v1680_v5, %v1679_v4  ;;  %v1686_v20 = vld [vmem:[%s2378_s3 + $0x38] sm:$0xff] }
  0x16   : > { %s1655_s11 = sshll.u32 %s2389_s15, 3  ;;  %1892 = vmatpush3.bf16.msra.mxu0 %v1889_v11  ;;  %1798 = vmatprep.subr.mxu1 %v2068_v14 }
  0x17   : > { %s250_s14 = scalar_lea.vmem %s2375_s0, %s1655_s11  ;;  %1902 = vmatprep.subr.bf16.mxu0 %v1901_v22  ;;  %s1653_s11 = sshll.u32 %s243_s10, 4 }
  0x18   : > { %v2184_v12 = vld [vmem:[%s250_s14] sm:$0xff]  ;;  %v2188_v13 = vld [vmem:[%s250_s14 + $0x8] sm:$0xff]  ;;  %s245_s14 = scalar_lea.vmem [#allocation2], %s1653_s11 }
  0x19   : > { %1784 = vmatprep.mubr.msk.f32.mxu1 %vm266_vm0, %v2184_v12  ;;  %1773 = vmatprep.mubr.msk.f32.mxu0 %vm266_vm0, %v2184_v12  ;;  %s1587_s15 = sshll.u32 %s245_s14, 4  ;;  %s2325_s15 = int_to_ptr.vmem [resolvable:$true] %s1587_s15 }
  0x1a   : > { %1785 = vmatmul.mubr.msk.f32.vlgmr.msra.gmra.mrb[0].mxu1 %vm266_vm0, %v2188_v13  ;;  %1774 = vmatmul.mubr.msk.f32.vlgmr.msra.gmra.mrb[0].mxu0 %vm266_vm0, %v2188_v13  ;;  %s2004_s25 = scalar_lea.vmem %s2325_s15, 256  ;;  %p2011_p0 = scmp.lt.s32.totalorder %s2325_s15, %s2009_s28 }
  0x1b   : > { %1795 = vmatprep.mubr.msk.f32.mxu0 %vm266_vm0, %v2184_v12  ;;  %1800 = vmatprep.mubr.msk.f32.mxu1 %vm2069_vm1, %v2068_v14  ;;  %p2005_p11 = scmp.ne.s32.totalorder %s2325_s15, %s2004_s25  ;;  %p2012_p1 = scmp.lt.s32.totalorder %s2010_s29, %s2004_s25 }
  0x1c   : > { %1904 = vmatpush3.bf16.msra.mxu0 %v1901_v22 }
  0x1d   : > { %1906 = vmatprep.subr.bf16.mxu0 %v1905_v24  ;;  %p2006_p12 = pnand %p2005_p11, %p2146_p5  ;;  %p2013_p2 = por %p2012_p1, %p2011_p0 }
  0x1f   : > { %p2007_p13 = pneg %p2006_p12 }
  0x20   : > { %1908 = vmatpush3.bf16.msra.mxu0 %v1905_v24 }
  0x21   : > { %1910 = vmatprep.subr.bf16.mxu0 %v1909_v57  ;;  %p2014_p3 = pnand %p2013_p2, %p2007_p13 }
  0x23   : > { %1796 = vmatmul.mubr.msk.f32.vlgmr.msra.gmra.mrb[2].mxu0 %vm266_vm0, %v2188_v13 }
  0x24   : > { %1912 = vmatpush3.bf16.msra.mxu0 %v1909_v57  ;;  %v1656_v57 = vld [vmem:[%s2380_s5] ss:$0 sm:$0xff] }
  0x25   : > { %1922 = vmatprep.subr.bf16.mxu0 %v1921_v60 }
  0xed   : > { %v1786_v15 = vpop.f32.mrb[0].mxu1  ;;  %v1775_v17 = vpop.f32.mrb[0].mxu0 }
  0xee   : > { %v418_v16 = vpop.f32.mrb[1].mxu1  ;;  %v339_v18 = vpop.f32.mrb[1].mxu0 }
  0xef   : > { %1799 = vmatpush3.xpose.msk.msra.mxu1 %vm506_vm2, %v418_v16 }
  0xf0   : > { %1803 = vmatprep.subr.mxu1 %v2068_v14 }
  0xf2   : > { %1801 = vmatmul.mubr.msk.f32.vlgmr.msra.gmra.mrb[2].mxu1 %vm506_vm2, %v339_v18  ;;  %v1685_v18 = vld [vmem:[%s2378_s3 + $0x30] sm:$0xff] }
  0xf3   : > { %1804 = vmatpush3.xpose.msk.msra.mxu1 %vm506_vm2, %v1786_v15  ;;  %1805 = vmatprep.mubr.msk.f32.mxu1 %vm2069_vm1, %v2068_v14  ;;  %v1933_v21 = vpack.c.bf16 %v1686_v20, %v1685_v18 }
  0xf4   : > { %1808 = vmatprep.subr.mxu1 %v2068_v14 }
  0xf6   : > { %1806 = vmatmul.mubr.msk.f32.vlgmr.msra.gmra.mrb[4].mxu1 %vm506_vm2, %v1775_v17  ;;  %v1797_v41 = vpop.f32.mrb[2].mxu0  ;;  %v1684_v17 = vld [vmem:[%s2378_s3 + $0x28] sm:$0xff] }
  0xf7   : > { %1810 = vmatprep.mubr.msk.f32.mxu1 %vm2069_vm1, %v2068_v14  ;;  %v497_v42 = vpop.f32.mrb[3].mxu0 }
  0xf8   : > { %1809 = vmatpush3.msra.mxu1 %v497_v42 }
  0xf9   : > { %1813 = vmatprep.subr.mxu1 %v2068_v14 }
 0x1c5   : > { %v579_v25 = vpop.f32.mrb[2].mxu1 }
 0x1c6   : > { %v1802_v26 = vpop.f32.mrb[3].mxu1  ;;  %v660_v27 = vsel %vm659_vm3, %v579_v25, -inf }
 0x1c7   : > { %661 = vmax.xlane.f32.xlu0 %v660_v27 }
 0x1c9   : > { %v655_v28 = vpop.f32.mrb[4].mxu1 }
 0x1ca   : > { %v1807_v29 = vpop.f32.mrb[5].mxu1  ;;  %v663_v30 = vsel %vm659_vm3, %v655_v28, -inf }
 0x1cb   : > { %664 = vmax.xlane.f32.xlu0 %v663_v30 }
 0x254   : > { %v662_v31 = vpop.xlane.xlu0 %661 }
 0x255   : > { %v666_v32 = vsub.f32 %v579_v25, %v662_v31 }
 0x257   : > { %v668_v33 = vmul.f32 1.442695, %v666_v32 }
 0x258   : > { %v665_v34 = vpop.xlane.xlu0 %664 }
 0x259   : > { %1988 = vpow2.f32 %v668_v33  ;;  %v667_v35 = vsub.f32 %v655_v28, %v665_v34 }
 0x25b   : > { %v670_v36 = vmul.f32 1.442695, %v667_v35 }
 0x25d   : > { %1990 = vpow2.f32 %v670_v36 }
 0x263   : > { %v1989_v37 = vpop.eup %1988 }
 0x264   : > { %v672_v38 = vsel %vm659_vm3, %v1989_v37, 0.0 }
 0x265   : > { %673 = vadd.xlane.f32.xlu1 %v672_v38 }
 0x267   : > { %v1991_v39 = vpop.eup %1990 }
 0x268   : > { %v675_v40 = vsel %vm659_vm3, %v1991_v39, 0.0 }
 0x269   : > { %676 = vadd.xlane.f32.xlu1 %v675_v40 }
 0x2f2   : > { %v674_v43 = vpop.xlane.xlu1 %673 }
 0x2f3   : > { %1992 = vrcp.f32 %v674_v43 }
 0x2f6   : > { %v677_v44 = vpop.xlane.xlu1 %676 }
 0x2f7   : > { %1994 = vrcp.f32 %v677_v44 }
 0x2fd   : > { %v1993_v45 = vpop.eup %1992 }
 0x2fe   : > { %v680_v46 = vmul.f32 %v1993_v45, %v674_v43 }
 0x300   : > { %v682_v47 = vsub.f32 2.0, %v680_v46 }
 0x301   : > { %v1995_v48 = vpop.eup %1994 }
 0x302   : > { %v684_v49 = vmul.f32 %v1993_v45, %v682_v47  ;;  %v681_v50 = vmul.f32 %v1995_v48, %v677_v44 }
 0x304   : > { %v686_v51 = vmul.f32 %v1989_v37, %v684_v49  ;;  %v683_v52 = vsub.f32 2.0, %v681_v50  ;;  %v1695_v50 = vld [vmem:[%s2379_s4 + $0x10] sm:$0xff] }
 0x306   : > { %v685_v53 = vmul.f32 %v1995_v48, %v683_v52  ;;  %1811 = vmatmul.mubr.msk.f32.vlgmr.msra.gmra.mrb[6].mxu1 %vm659_vm3, %v686_v51  ;;  %v1696_v51 = vld [vmem:[%s2379_s4 + $0x18] sm:$0xff] }
 0x307   : > { %1814 = vmatpush3.msra.mxu1 %v1797_v41  ;;  %1815 = vmatprep.mubr.msk.f32.mxu1 %vm2069_vm1, %v2068_v14  ;;  %v1937_v52 = vpack.c.bf16 %v1696_v51, %v1695_v50 }
 0x308   : > { %v687_v54 = vmul.f32 %v1991_v39, %v685_v53  ;;  %1914 = vmatprep.subr.bf16.mxu1 %v1913_v63 }
 0x30a   : > { %1816 = vmatmul.mubr.msk.f32.vlgmr.msra.gmra.mrb[8].mxu1 %vm659_vm3, %v687_v54 }
 0x30b   : > { %1833 = vmatprep.mubr.msk.f32.mxu1 %vm266_vm0, %v2184_v12  ;;  %1916 = vmatpush3.bf16.msra.mxu1 %v1913_v63 }
 0x30c   : > { %1918 = vmatprep.subr.bf16.mxu1 %v1917_v2 }
 0x30f   : > { %1920 = vmatpush3.bf16.msra.mxu1 %v1917_v2 }
 0x312   : > { %1834 = vmatmul.mubr.msk.f32.vlgmr.msra.gmra.mrb[10].mxu1 %vm266_vm0, %v2188_v13 }
 0x313   : > { %1855 = vmatprep.mubr.msk.f32.mxu1 %vm266_vm0, %v2184_v12 }
 0x3d9   : > { %v757_v3 = vpop.f32.mrb[6].mxu1 }
 0x3da   : > { %v1812_v6 = vpop.f32.mrb[7].mxu1  ;;  %1822 = vmatprep.mubr.msk.f32.mxu0 %vm506_vm2, %v757_v3 }
 0x3dd   : > { %v830_v8 = vpop.f32.mrb[8].mxu1 }
 0x3de   : > { %v1817_v9 = vpop.f32.mrb[9].mxu1  ;;  %1823 = vmatmul.mubr.msk.f32.vlgmr.msra.gmra.mrb[4].mxu0 %vm506_vm2, %v830_v8 }
 0x3df   : > { %1924 = vmatpush3.bf16.msra.mxu0 %v1921_v60  ;;  %1844 = vmatprep.mubr.msk.f32.mxu0 %vm266_vm0, %v2184_v12  ;;  %v1683_v12 = vld [vmem:[%s2378_s3 + $0x20] sm:$0xff] }
 0x3e0   : > { %1926 = vmatprep.subr.bf16.mxu0 %v1925_v7  ;;  %v1929_v19 = vpack.c.bf16 %v1684_v17, %v1683_v12 }
 0x3e2   : > { %1930 = vmatprep.subr.bf16.mxu1 %v1929_v19 }
 0x3e3   : > { %1928 = vmatpush3.bf16.msra.mxu0 %v1925_v7  ;;  %1932 = vmatpush3.bf16.msra.mxu1 %v1929_v19 }
 0x3e4   : > { %1858 = vmatprep.subr.mxu0 %v2068_v14  ;;  %1934 = vmatprep.subr.bf16.mxu1 %v1933_v21 }
 0x3e5   : > { %v1835_v10 = vpop.f32.mrb[10].mxu1 }
 0x3e6   : > { %1845 = vmatmul.mubr.msk.f32.vlgmr.msra.gmra.mrb[6].mxu0 %vm266_vm0, %v2188_v13  ;;  %v990_v11 = vpop.f32.mrb[11].mxu1 }
 0x3e7   : > { %1860 = vmatprep.mubr.msk.f32.mxu0 %vm2069_vm1, %v2068_v14  ;;  %1936 = vmatpush3.bf16.msra.mxu1 %v1933_v21 }
 0x3e8   : > { %1868 = vmatprep.subr.mxu1 %v2068_v14 }
 0x3ea   : > { %1856 = vmatmul.mubr.msk.f32.vlgmr.msra.gmra.mrb[12].mxu1 %vm266_vm0, %v2188_v13 }
 0x3eb   : > { %1870 = vmatprep.mubr.msk.f32.mxu1 %vm2069_vm1, %v2068_v14 }
 0x4b9   : > { %v1846_v15 = vpop.f32.mrb[6].mxu0 }
 0x4ba   : > { %v1070_v16 = vpop.f32.mrb[7].mxu0 }
 0x4bb   : > { %1859 = vmatpush3.xpose.msk.msra.mxu0 %vm506_vm2, %v1070_v16 }
 0x4bc   : > { %1863 = vmatprep.subr.mxu0 %v2068_v14 }
 0x4bd   : > { %v1857_v36 = vpop.f32.mrb[12].mxu1 }
 0x4be   : > { %1861 = vmatmul.mubr.msk.f32.vlgmr.msra.gmra.mrb[8].mxu0 %vm506_vm2, %v990_v11  ;;  %v1150_v37 = vpop.f32.mrb[13].mxu1 }
 0x4bf   : > { %1864 = vmatpush3.xpose.msk.msra.mxu0 %vm506_vm2, %v1846_v15  ;;  %1865 = vmatprep.mubr.msk.f32.mxu0 %vm2069_vm1, %v2068_v14 }
 0x4c0   : > { %1873 = vmatprep.subr.mxu0 %v2068_v14  ;;  %1869 = vmatpush3.msra.mxu1 %v1150_v37 }
 0x4c2   : > { %1866 = vmatmul.mubr.msk.f32.vlgmr.msra.gmra.mrb[10].mxu0 %vm506_vm2, %v1835_v10 }
 0x4c3   : > { %1875 = vmatprep.mubr.msk.f32.mxu0 %vm2069_vm1, %v2068_v14  ;;  %1874 = vmatpush3.msra.mxu0 %v1857_v36 }
 0x4c4   : > { %1938 = vmatprep.subr.bf16.mxu0 %v1937_v52 }
 0x591   : > { %v1231_v22 = vpop.f32.mrb[8].mxu0 }
 0x592   : > { %v1862_v23 = vpop.f32.mrb[9].mxu0  ;;  %v1311_v24 = vsel %vm659_vm3, %v1231_v22, -inf }
 0x593   : > { %1312 = vmax.xlane.f32.xlu0 %v1311_v24 }
 0x595   : > { %v1307_v25 = vpop.f32.mrb[10].mxu0 }
 0x596   : > { %v1867_v26 = vpop.f32.mrb[11].mxu0  ;;  %v1314_v27 = vsel %vm659_vm3, %v1307_v25, -inf }
 0x597   : > { %1315 = vmax.xlane.f32.xlu1 %v1314_v27 }
 0x620   : > { %v1313_v28 = vpop.xlane.xlu0 %1312 }
 0x621   : > { %v1317_v29 = vsub.f32 %v1231_v22, %v1313_v28 }
 0x623   : > { %v1319_v30 = vmul.f32 1.442695, %v1317_v29 }
 0x624   : > { %v1316_v31 = vpop.xlane.xlu1 %1315 }
 0x625   : > { %1996 = vpow2.f32 %v1319_v30  ;;  %v1318_v32 = vsub.f32 %v1307_v25, %v1316_v31 }
 0x627   : > { %v1321_v13 = vmul.f32 1.442695, %v1318_v32 }
 0x629   : > { %1998 = vpow2.f32 %v1321_v13 }
 0x62f   : > { %v1997_v33 = vpop.eup %1996 }
 0x630   : > { %v1323_v14 = vsel %vm659_vm3, %v1997_v33, 0.0 }
 0x631   : > { %1324 = vadd.xlane.f32.xlu0 %v1323_v14 }
 0x633   : > { %v1999_v34 = vpop.eup %1998 }
 0x634   : > { %v1326_v35 = vsel %vm659_vm3, %v1999_v34, 0.0 }
 0x635   : > { %1327 = vadd.xlane.f32.xlu1 %v1326_v35 }
 0x6be   : > { %v1325_v38 = vpop.xlane.xlu0 %1324 }
 0x6bf   : > { %2000 = vrcp.f32 %v1325_v38 }
 0x6c2   : > { %v1328_v39 = vpop.xlane.xlu1 %1327 }
 0x6c3   : > { %2002 = vrcp.f32 %v1328_v39 }
 0x6c9   : > { %v2001_v40 = vpop.eup %2000 }
 0x6ca   : > { %v1331_v41 = vmul.f32 %v2001_v40, %v1325_v38 }
 0x6cc   : > { %v1333_v42 = vsub.f32 2.0, %v1331_v41 }
 0x6cd   : > { %v2003_v43 = vpop.eup %2002 }
 0x6ce   : > { %v1335_v44 = vmul.f32 %v2001_v40, %v1333_v42  ;;  %v1332_v45 = vmul.f32 %v2003_v43, %v1328_v39 }
 0x6d0   : > { %v1337_v46 = vmul.f32 %v1997_v33, %v1335_v44  ;;  %v1334_v47 = vsub.f32 2.0, %v1332_v45 }
 0x6d2   : > { %v1336_v48 = vmul.f32 %v2003_v43, %v1334_v47  ;;  %1871 = vmatmul.mubr.msk.f32.vlgmr.msra.gmra.mrb[14].mxu1 %vm659_vm3, %v1337_v46 }
 0x6d4   : > { %v1338_v49 = vmul.f32 %v1999_v34, %v1336_v48 }
 0x6d6   : > { %1876 = vmatmul.mubr.msk.f32.vlgmr.msra.gmra.mrb[12].mxu0 %vm659_vm3, %v1338_v49 }
 0x6d7   : > { %1940 = vmatpush3.bf16.msra.mxu0 %v1937_v52 }
 0x7a5   : > { %v1408_v53 = vpop.f32.mrb[14].mxu1 }
 0x7a6   : > { %v1872_v54 = vpop.f32.mrb[15].mxu1  ;;  %1882 = vmatprep.mubr.msk.f32.mxu0 %vm506_vm2, %v1408_v53 }
 0x7a9   : > { %v1481_v55 = vpop.f32.mrb[12].mxu0 }
 0x7aa   : > { %v1877_v56 = vpop.f32.mrb[13].mxu0  ;;  %1883 = vmatmul.mubr.msk.f32.vlgmr.msra.gmra.mrb[4].mxu0 %vm506_vm2, %v1481_v55 }
 0x87d   : > { %v1884_v58 = vpop.f32.mrb[4].mxu0 }
 0x87e   : > { %v1941_v59 = vadd.f32 %v1884_v58, %v1656_v57  ;;  %v1560_v60 = vpop.f32.mrb[5].mxu0 }
 0x87f   : > { %v1942_v61 = vadd.f32 %v1656_v57, %v1560_v60 }
 0x880   : > { %1572 = vst.msk [vmem:[%s245_s14 + $0x8] sm:$0xff] %vm266_vm0, %v1941_v59 }
 0x881   : > { %1571 = vst.msk [vmem:[%s245_s14] sm:$0xff] %vm266_vm0, %v1942_v61 }
 0x882   : > { %2017 = shalt.err (!%p2014_p3)
}
 0x883   : > { %s2018_s9 = scalar_lea.hbm %s2330_s19, 256  ;;  %s2022_s12 = scalar_lea.hbm %s2381_s6, 512 }
 0x884   : > { %p2019_p4 = scmp.ne.s32.totalorder %s2330_s19, %s2018_s9  ;;  %p2023_p9 = scmp.lt.u32.totalorder %s2330_s19, %s2381_s6 }
 0x885   : > { %p2024_p10 = scmp.lt.u32.totalorder %s2022_s12, %s2018_s9  ;;  %p2026_p12 = scmp.lt.u32.totalorder %s2018_s9, %s2330_s19 }
 0x886   : > { %p2020_p7 = pnand %p2019_p4, %p2146_p5 }
 0x887   : > { %p2025_p11 = por %p2024_p10, %p2023_p9 }
 0x888   : > { %p2021_p8 = pneg %p2020_p7 }
 0x889   : > { %p2027_p13 = por %p2026_p12, %p2025_p11 }
 0x88b   : > { %p2028_p0 = pnand %p2027_p13, %p2021_p8 }
 0x88d   : > { %2031 = shalt.err (!%p2028_p0)
}
 0x88e   : > { %s2071_s16 = smov 128   ;;  %s2072_s17 = smov 8  }
 0x88f   : > { %1945 = dma.vmem_to_hbm [thread:$0]  (%p2146_p5), %s2325_s15, 256, %s2330_s19, %s2334_s20, %s2071_s16, %s2071_s16, %s2072_s17  }
 0x890 PF: > { %p1951_p1 = scmp.ge.s32.totalorder %s2066_s24, 2  ;;  %s1602_s18 = sand.u32 1, %s2054_s21  }
 0x891   : > { %s1603_s25 = scalar_lea.sflag [#allocation3], %s1602_s18 }
 0x892   : > { %p1948_p2 = pnand %p1951_p1, %p2150_p6 }
 0x894   : > { %2049 = dma.done.wait (!%p1948_p2), %s1603_s25, 256  }
 0x895   : > { %2051 = vsyncadd (!%p1948_p2), %s1603_s25, 4294967040  ;;  %p16_p3 = scmp.ge.s32.totalorder %s2133_s27, 4   ;;  %s2384_s21 = smov %s2058_s22 }
 0x896   : > { %s2385_s22 = smov %s2062_s23  ;;  %s2386_s23 = smov %s2144_s30 }
 0x897   : > { %s2387_s24 = smov %s2133_s27  ;;  %18 = sbr.rel (!%p16_p3) target bundleno = 3 (0x3), region = 83 }
 0x89e   :  { %1608 = vsyncpa [#allocation3], 1 }
 0x89f   :  { %1610 = vsyncpa [#allocation3 + $0x1], 1 }

</bundles_post_ra>
